<compile_context>
chip_gen: v7x
topology: tpu7x:2x2x1
jax: 0.10.0
libtpu: 0.0.40
codegen_flags: <defaults>
</compile_context>

<pallas_src>
import functools

import jax
import jax.numpy as jnp
from jax.experimental import pallas as pl
from jax.experimental.pallas import tpu as pltpu


def _round_up(n, m):
    return ((n + m - 1) // m) * m


def _cdiv(a, b):
    return -(-a // b)


def _fourier_lifting_kernel(x_ref, freq_ref, o_ref, *, num_frequencies, input_dim):
    # x_ref:    (rt, D)            VMEM
    # freq_ref: (1, F*D)           VMEM  (per-column frequency constants)
    # o_ref:    (rt, D*(1+2F))     VMEM
    D = input_dim
    F = num_frequencies

    x = x_ref[...]                                     # (rt, D)
    # Replicate x across the frequency axis once (XLU relayout, off the
    # store/EUP critical path), then one full-width VPU multiply.
    x_rep = jnp.concatenate([x] * F, axis=-1)          # (rt, F*D)
    z = x_rep * freq_ref[...]                          # broadcast over rows

    # Full-width transcendentals: exactly one sin OR cos per output frequency
    # element, each issued over >=128-lane-wide values.
    s = jnp.sin(z)                                     # (rt, F*D)
    c = jnp.cos(z)                                     # (rt, F*D)

    # Interleave [x, sin f0, cos f0, sin f1, cos f1, ...] once in registers /
    # VMEM, then a single lane-dense store of the whole row tile.
    parts = [x]
    for k in range(F):
        parts.append(s[:, k * D:(k + 1) * D])
        parts.append(c[:, k * D:(k + 1) * D])
    o_ref[...] = jnp.concatenate(parts, axis=-1)


def fourier_lifting(x, num_frequencies=10, row_tile=1024, min_grid_steps=4):
    """x: (batch, seq_len, input_dim) -> (batch, seq_len, input_dim*(1+2F))."""
    batch, seq_len, input_dim = x.shape
    F = num_frequencies
    n_rows = batch * seq_len
    d_freq = F * input_dim
    d_out = input_dim * (1 + 2 * F)
    dtype = x.dtype
    itemsize = jnp.dtype(dtype).itemsize

    # Frequencies exactly as the module buffer (2^i is exact in f32, so
    # f32(2^i * pi) == f32(2^i) * f32(pi): matches the reference bit-for-bit).
    freq_bands = [float(2.0 ** i) * float(jnp.pi) for i in range(F)]
    # Per-column vector: column k*D+d carries f_k (built once, passed as input).
    freq_row = jnp.asarray(
        [f for f in freq_bands for _ in range(input_dim)], dtype=dtype
    ).reshape(1, d_freq)

    # --- row-tile sizing ------------------------------------------------
    LANE = 128

    def lane_pad(n):
        return _round_up(max(int(n), 1), LANE)

    # Honest per-row VMEM footprint: lane-padded double-buffered in/out blocks
    # plus the full-width intermediates (z, sin, cos, assembled row).
    bytes_per_row = itemsize * (
        2 * lane_pad(input_dim)      # double-buffered input block
        + 2 * lane_pad(d_out)        # double-buffered output block
        + 3 * lane_pad(d_freq)       # z, sin, cos intermediates
        + lane_pad(d_out)            # assembled row tile before the store
    )
    vmem_budget = 10 * 1024 * 1024   # v5e-safe; ample headroom on v6e/v7x.
    rt = min(int(row_tile), max(8, vmem_budget // bytes_per_row))

    # Keep at least `min_grid_steps` grid steps so the "parallel" row axis can
    # be sharded across v7x's two TensorCores (no-op on v5e/v6e).
    rows_per_step = _round_up(_cdiv(n_rows, max(min_grid_steps, 1)), 8)
    rt = min(rt, max(8, rows_per_step))
    rt = max(8, (rt // 8) * 8)

    grid_steps = _cdiv(n_rows, rt)
    n_rows_padded = grid_steps * rt

    # Cheap input pad (input is 1/(1+2F) of the output traffic).  The output
    # stays un-padded: Pallas masks the ragged last output block, so we never
    # re-copy the 21x-sized output.
    x2d = x.reshape(n_rows, input_dim)
    if n_rows_padded != n_rows:
        x2d = jnp.pad(x2d, ((0, n_rows_padded - n_rows), (0, 0)))

    kernel = functools.partial(
        _fourier_lifting_kernel, num_frequencies=F, input_dim=input_dim
    )

    n_elems = n_rows * input_dim
    cost = pl.CostEstimate(
        flops=2 * F * n_elems,                       # z multiply + interleave-ish VPU work
        transcendentals=2 * F * n_elems,             # one sin or cos per frequency output
        bytes_accessed=itemsize * (n_rows * (input_dim + d_out) + d_freq),
    )

    out2d = pl.pallas_call(
        kernel,
        out_shape=jax.ShapeDtypeStruct((n_rows, d_out), dtype),
        grid_spec=pltpu.PrefetchScalarGridSpec(
            num_scalar_prefetch=0,
            grid=(grid_steps,),
            in_specs=[
                pl.BlockSpec((rt, input_dim), lambda i: (i, 0)),
                pl.BlockSpec((1, d_freq), lambda i: (0, 0)),
            ],
            out_specs=pl.BlockSpec((rt, d_out), lambda i: (i, 0)),
        ),
        compiler_params=pltpu.CompilerParams(
            # Parallel row axis: lets Mosaic shard grid steps across the two
            # TensorCores on v7x (no-op on single-TC v5e/v6e).
            dimension_semantics=("parallel",),
        ),
        cost_estimate=cost,
    )(x2d, freq_row)

    return out2d.reshape(batch, seq_len, d_out)


def fourier_lifting_reference(x, num_frequencies=10):
    """Pure-JAX reference mirroring the PyTorch forward."""
    freq_bands = (2.0 ** jnp.arange(num_frequencies, dtype=x.dtype)) * jnp.pi
    parts = [x]
    for i in range(num_frequencies):
        f = freq_bands[i]
        parts.append(jnp.sin(f * x))
        parts.append(jnp.cos(f * x))
    return jnp.concatenate(parts, axis=-1)


if __name__ == "__main__":
    key = jax.random.PRNGKey(0)
    num_frequencies = 10

    # Case 1: module-scale shape.
    batch, seq_len, input_dim = 2, 8, 32
    x = jax.random.normal(key, (batch, seq_len, input_dim), dtype=jnp.float32)
    out = jax.block_until_ready(fourier_lifting(x, num_frequencies=num_frequencies))
    ref = fourier_lifting_reference(x, num_frequencies=num_frequencies)
    assert out.shape == (batch, seq_len, input_dim * (1 + 2 * num_frequencies)), out.shape
    assert jnp.allclose(out, ref, atol=1e-5, rtol=1e-5), float(jnp.max(jnp.abs(out - ref)))

    # Case 2: row count not a multiple of the tile (exercises the ragged
    # last-output-block path; no padded-output copy).
    batch2, seq_len2 = 3, 5
    x2 = jax.random.normal(jax.random.PRNGKey(1), (batch2, seq_len2, input_dim),
                           dtype=jnp.float32)
    out2 = jax.block_until_ready(fourier_lifting(x2, num_frequencies=num_frequencies))
    ref2 = fourier_lifting_reference(x2, num_frequencies=num_frequencies)
    assert out2.shape == (batch2, seq_len2, input_dim * (1 + 2 * num_frequencies)), out2.shape
    assert jnp.allclose(out2, ref2, atol=1e-5, rtol=1e-5), float(jnp.max(jnp.abs(out2 - ref2)))

    print("KERNEL_OK")
</pallas_src>

<mosaic_0001>
module attributes {stable_mosaic.version = 11 : i64} {
  func.func @_fourier_lifting_kernel(%arg0: i32, %arg1: memref<8x32xf32, #tpu.memory_space<vmem>>, %arg2: memref<1x320xf32, #tpu.memory_space<vmem>>, %arg3: memref<8x672xf32, #tpu.memory_space<vmem>>) attributes {dimension_semantics = [#tpu.dimension_semantics<parallel>], iteration_bounds = array<i64: 2>, scalar_prefetch = 0 : i64, scratch_operands = 0 : i64, tpu.core_type = #tpu.core_type<tc>, window_params = [{transform_indices = @transform_0, window_bounds = array<i64: 8, 32>}, {pipeline_mode = #tpu.pipeline_mode<synchronous>, transform_indices = @transform_1, window_bounds = array<i64: 1, 320>}, {transform_indices = @transform_2, window_bounds = array<i64: 8, 672>}]} {
    %c0 = arith.constant 0 : index
    %c0_0 = arith.constant 0 : index
    %0 = vector.load %arg1[%c0, %c0_0] : memref<8x32xf32, #tpu.memory_space<vmem>>, vector<8x32xf32>
    %1 = tpu.concatenate %0, %0, %0, %0, %0, %0, %0, %0, %0, %0 in 1 : vector<8x32xf32>, vector<8x32xf32>, vector<8x32xf32>, vector<8x32xf32>, vector<8x32xf32>, vector<8x32xf32>, vector<8x32xf32>, vector<8x32xf32>, vector<8x32xf32>, vector<8x32xf32> -> vector<8x320xf32>
    %c0_1 = arith.constant 0 : index
    %c0_2 = arith.constant 0 : index
    %2 = vector.load %arg2[%c0_1, %c0_2] : memref<1x320xf32, #tpu.memory_space<vmem>>, vector<1x320xf32>
    %3 = vector.broadcast %2 : vector<1x320xf32> to vector<8x320xf32>
    %4 = arith.mulf %1, %3 : vector<8x320xf32>
    %5 = math.sin %4 : vector<8x320xf32>
    %6 = math.cos %4 : vector<8x320xf32>
    %7 = vector.extract_strided_slice %5 {offsets = [0, 0], sizes = [8, 32], strides = [1, 1]} : vector<8x320xf32> to vector<8x32xf32>
    %8 = vector.extract_strided_slice %6 {offsets = [0, 0], sizes = [8, 32], strides = [1, 1]} : vector<8x320xf32> to vector<8x32xf32>
    %9 = vector.extract_strided_slice %5 {offsets = [0, 32], sizes = [8, 32], strides = [1, 1]} : vector<8x320xf32> to vector<8x32xf32>
    %10 = vector.extract_strided_slice %6 {offsets = [0, 32], sizes = [8, 32], strides = [1, 1]} : vector<8x320xf32> to vector<8x32xf32>
    %11 = vector.extract_strided_slice %5 {offsets = [0, 64], sizes = [8, 32], strides = [1, 1]} : vector<8x320xf32> to vector<8x32xf32>
    %12 = vector.extract_strided_slice %6 {offsets = [0, 64], sizes = [8, 32], strides = [1, 1]} : vector<8x320xf32> to vector<8x32xf32>
    %13 = vector.extract_strided_slice %5 {offsets = [0, 96], sizes = [8, 32], strides = [1, 1]} : vector<8x320xf32> to vector<8x32xf32>
    %14 = vector.extract_strided_slice %6 {offsets = [0, 96], sizes = [8, 32], strides = [1, 1]} : vector<8x320xf32> to vector<8x32xf32>
    %15 = vector.extract_strided_slice %5 {offsets = [0, 128], sizes = [8, 32], strides = [1, 1]} : vector<8x320xf32> to vector<8x32xf32>
    %16 = vector.extract_strided_slice %6 {offsets = [0, 128], sizes = [8, 32], strides = [1, 1]} : vector<8x320xf32> to vector<8x32xf32>
    %17 = vector.extract_strided_slice %5 {offsets = [0, 160], sizes = [8, 32], strides = [1, 1]} : vector<8x320xf32> to vector<8x32xf32>
    %18 = vector.extract_strided_slice %6 {offsets = [0, 160], sizes = [8, 32], strides = [1, 1]} : vector<8x320xf32> to vector<8x32xf32>
    %19 = vector.extract_strided_slice %5 {offsets = [0, 192], sizes = [8, 32], strides = [1, 1]} : vector<8x320xf32> to vector<8x32xf32>
    %20 = vector.extract_strided_slice %6 {offsets = [0, 192], sizes = [8, 32], strides = [1, 1]} : vector<8x320xf32> to vector<8x32xf32>
    %21 = vector.extract_strided_slice %5 {offsets = [0, 224], sizes = [8, 32], strides = [1, 1]} : vector<8x320xf32> to vector<8x32xf32>
    %22 = vector.extract_strided_slice %6 {offsets = [0, 224], sizes = [8, 32], strides = [1, 1]} : vector<8x320xf32> to vector<8x32xf32>
    %23 = vector.extract_strided_slice %5 {offsets = [0, 256], sizes = [8, 32], strides = [1, 1]} : vector<8x320xf32> to vector<8x32xf32>
    %24 = vector.extract_strided_slice %6 {offsets = [0, 256], sizes = [8, 32], strides = [1, 1]} : vector<8x320xf32> to vector<8x32xf32>
    %25 = vector.extract_strided_slice %5 {offsets = [0, 288], sizes = [8, 32], strides = [1, 1]} : vector<8x320xf32> to vector<8x32xf32>
    %26 = vector.extract_strided_slice %6 {offsets = [0, 288], sizes = [8, 32], strides = [1, 1]} : vector<8x320xf32> to vector<8x32xf32>
    %27 = tpu.concatenate %0, %7, %8, %9, %10, %11, %12, %13, %14, %15, %16, %17, %18, %19, %20, %21 in 1 : vector<8x32xf32>, vector<8x32xf32>, vector<8x32xf32>, vector<8x32xf32>, vector<8x32xf32>, vector<8x32xf32>, vector<8x32xf32>, vector<8x32xf32>, vector<8x32xf32>, vector<8x32xf32>, vector<8x32xf32>, vector<8x32xf32>, vector<8x32xf32>, vector<8x32xf32>, vector<8x32xf32>, vector<8x32xf32> -> vector<8x512xf32>
    %28 = tpu.concatenate %22, %23, %24, %25, %26 in 1 : vector<8x32xf32>, vector<8x32xf32>, vector<8x32xf32>, vector<8x32xf32>, vector<8x32xf32> -> vector<8x160xf32>
    %29 = tpu.concatenate %27, %28 in 1 : vector<8x512xf32>, vector<8x160xf32> -> vector<8x672xf32>
    %c0_3 = arith.constant 0 : index
    %c0_4 = arith.constant 0 : index
    %30 = vector.load %arg3[%c0_3, %c0_4] : memref<8x672xf32, #tpu.memory_space<vmem>>, vector<8x672xf32>
    tpu.vector_store %arg3[%c0_3, %c0_4], %29 {strides = array<i32>} : memref<8x672xf32, #tpu.memory_space<vmem>>, vector<8x672xf32>,
    return
  }
  func.func @transform_0(%arg0: i32) -> (i32, i32) {
    %c0_i32 = arith.constant 0 : i32
    %c0_i32_0 = arith.constant 0 : i32
    return %arg0, %c0_i32 : i32, i32
  }
  func.func @transform_1(%arg0: i32) -> (i32, i32) {
    %c0_i32 = arith.constant 0 : i32
    %c0_i32_0 = arith.constant 0 : i32
    %c0_i32_1 = arith.constant 0 : i32
    return %c0_i32, %c0_i32_0 : i32, i32
  }
  func.func @transform_2(%arg0: i32) -> (i32, i32) {
    %c0_i32 = arith.constant 0 : i32
    %c0_i32_0 = arith.constant 0 : i32
    return %arg0, %c0_i32 : i32, i32
  }
}

</mosaic_0001>

<bundles_post_ra>
// kernel: tpu_custom_call.1
= control target key start
LH: loop header
LB: loop body
LE: loop exit
PB: predicated region body
PF: predicated region fallthrough
CT: control target
= control target key end

     0   :  { %7 = vsyncpa [#allocation3], 0  ;;  %s1686_s0 = inlined_call_operand.hbm [shape: f32[16,32], index: 0, kind: input, shape index: {}]   ;;  %s1687_s1 = inlined_call_operand.vmem [shape: f32[1,320], index: 1, kind: input, shape index: {}]   ;;  %s1688_s2 = inlined_call_operand.hbm [shape: f32[16,672], index: 2, kind: output, shape index: {}]  }
   0x1   :  { %9 = vsyncpa [#allocation3 + $0x1], 0 }
   0x2   :  { %10 = vsyncpa [#allocation4], 0 }
   0x3   :  { %12 = vsyncpa [#allocation4 + $0x1], 0  ;;  %s1216_s9 = smov 0   ;;  %s1218_s10 = smov 0  }
   0x4   :  { %s1220_s11 = smov 0   ;;  %s1222_s12 = smov 0  }
   0x5 LB: > { %s1237_s13 = sadd.s32 4294967295, %s1188_s12   ;;  %s977_s14 = sadd.s32 4294967294, %s1188_s12   ;;  %s1188_s12 = sphi %s1222_s12, %s1707_s12   ;;  %s1184_s11 = sphi %s1220_s11, %s1706_s11   ;;  %s1180_s10 = sphi %s1218_s10, %s1705_s10   ;;  %s1176_s9 = sphi %s1216_s9, %s1704_s9  }
   0x6   : > { %s1241_s15 = sadd.s32 1, %s1188_s12   ;;  %s25_s16 = sadd.s32 1, %s1184_s11 }
   0x7   : > { %s22_s17 = ssub.s32 %s1188_s12, %s1241_s15  ;;  %p32_p0 = scmp.ne.s32.totalorder %s1184_s11, %s1180_s10 }
   0x8   : > { %p23_p1 = scmp.eq.s32.totalorder %s22_s17, 0  ;;  %p33_p2 = scmp.eq.s32.totalorder %s1188_s12, 0 }
   0x9   : > { %p38_p3 = scmp.ne.s32.totalorder %s1180_s10, %s1176_s9  ;;  %p39_p4 = scmp.eq.s32.totalorder %s1237_s13, 0 }
   0xa   : > { %s1253_s18 = scalar_select %p23_p1, %s1184_s11, %s25_s16  }
   0xb   : > { %p1255_p5 = por %p33_p2, %p32_p0  ;;  %p1259_p6 = por %p39_p4, %p38_p3 }
   0xc   : > { %p83_p7 = scmp.eq.s32.totalorder %s1237_s13, 1  ;;  %p89_p8 = scmp.eq.s32.totalorder %s977_s14, 1 }
   0xd   : > { %p1037_p10 = scmp.lt.s32.totalorder %s1188_s12, 2  ;;  %s112_s23 = sand.u32 1, %s1184_s11  }
   0xe   : > { %p1266_p11 = por %p83_p7, %p32_p0  ;;  %p1270_p12 = por %p89_p8, %p38_p3 }
   0xf   : > { %s981_s24 = sshll.u32 %s1188_s12, 7  ;;  %s980_s25 = sshll.u32 %s112_s23, 3 }
  0x10   : > { %s1692_s21 = scalar_select %p1266_p11, 1, 0 }
  0x11   : > { %s1693_s22 = scalar_select %p1270_p12, 1, 0 }
  0x12   : > { %s1279_s28 = scalar_lea.hbm %s1686_s0, %s981_s24  ;;  %s116_s29 = scalar_lea.vmem [#allocation2], %s980_s25 }
  0x13   : > { %s123_s30 = sshll.u32 %s116_s29, 4  ;;  %p1283_p13 = pnand %p1037_p10, %p1255_p5  ;;  %s1287_s30 = int_to_ptr.vmem [resolvable:$true] %s123_s30 }
  0x14   : > { %s113_s4 = scalar_lea.sflag [#allocation3], %s112_s23  ;;  %s1092_s5 = scalar_lea.hbm %s1279_s28, 128 }
  0x15   : > { %p1093_p2 = scmp.ne.s32.totalorder %s1279_s28, %s1092_s5  ;;  %p1094_p3 = pneg %p1283_p13 }
  0x16   : > { %s1097_s8 = scalar_lea.hbm %s1686_s0, 256  ;;  %p1098_p5 = scmp.lt.u32.totalorder %s1279_s28, %s1686_s0 }
  0x17   : > { %p1095_p4 = pnand %p1094_p3, %p1093_p2  ;;  %p1099_p8 = scmp.lt.u32.totalorder %s1097_s8, %s1092_s5 }
  0x18   : > { %p1101_p9 = scmp.lt.u32.totalorder %s1092_s5, %s1279_s28 }
  0x19   : > { %p1096_p7 = pneg %p1095_p4  ;;  %p1100_p10 = por %p1099_p8, %p1098_p5 }
  0x1b   : > { %p1102_p0 = por %p1101_p9, %p1100_p10 }
  0x1d   : > { %p1103_p1 = pnand %p1102_p0, %p1096_p7 }
  0x1f   : > { %1106 = shalt.err (!%p1103_p1)
}
  0x20   : > { %s1107_s17 = scalar_lea.vmem %s1287_s30, 128  ;;  %s1190_s19 = smov [#allocation2]  }
  0x21   : > { %p1108_p2 = scmp.ne.s32.totalorder %s1287_s30, %s1107_s17  ;;  %s1112_s23 = sshll.u32 %s1190_s19, 4  ;;  %s1113_s23 = int_to_ptr.vmem [resolvable:$false] %s1112_s23 }
  0x22   : > { %s1114_s24 = scalar_lea.vmem %s1113_s23, 256  ;;  %p1115_p11 = scmp.lt.s32.totalorder %s1287_s30, %s1113_s23 }
  0x23   : > { %p1110_p4 = pnand %p1108_p2, %p1094_p3  ;;  %p1116_p5 = scmp.lt.s32.totalorder %s1114_s24, %s1107_s17 }
  0x25   : > { %p1111_p12 = pneg %p1110_p4  ;;  %p1117_p8 = por %p1116_p5, %p1115_p11 }
  0x27   : > { %p1118_p9 = pnand %p1117_p8, %p1111_p12 }
  0x29   : > { %1121 = shalt.err (!%p1118_p9)
}
  0x2a   : > { %1032 = dma.hbm_to_vmem [thread:$0]  (!%p1283_p13), %s1279_s28, 128, %s1287_s30, %s113_s4  }
  0x2b   : > { %p1695_p0 = scmp.lt.s32.totalorder %s1188_s12, 3  ;;  %p1696_p1 = scmp.ge.s32.totalorder %s1188_s12, 1 }
  0x2d   : > { %p129_p3 = pnand %p1696_p1, %p1695_p0 }
  0x2e   : > { %s1321_s25 = sand.u32 (!%p129_p3), 1, %s1180_s10  }
  0x2f   : > { %132 = sbr.rel (%p129_p3) target bundleno = 423 (0x1a7), region = 28  ;;  %s983_s26 = sshll.u32 (!%p129_p3), %s1321_s25, 3 }
  0x30   : > { %s135_s27 = scalar_lea.sflag (!%p129_p3), [#allocation3], %s1321_s25  ;;  %s138_s29 = scalar_lea.vmem (!%p129_p3), [#allocation2], %s983_s26 }
  0x36   : > { %1167 = dma.done.wait (%p1259_p6), %s135_s27, 128  }
  0x37   : > { %1169 = vsyncadd (%p1259_p6), %s135_s27, 4294967168  ;;  %v1329_v0 = vld [vmem:[%s138_s29] sm:$0xff]  ;;  %s1191_s28 = smov 32   ;;  %s1192_s30 = smov 96   ;;  %v178_v1 = vlaneseq  ;;  %vm170_vm0 = vcmask 261120   ;;  %vm172_vm1 = vcmask 523264  }
  0x38   : > { %161 = vrot.lane.b32.xlu0 %v1329_v0, %s1191_s28  ;;  %167 = vrot.lane.b32.xlu1 %v1329_v0, %s1192_s30  ;;  %s1193_s3 = smov 64   ;;  %v176_v4 = vld [vmem:[%s1687_s1] sm:$0x7]  ;;  %vm174_vm2 = vcmask 785408   ;;  %v1194_v41 = vmov 920167782  }
  0x39   : > { %v179_v2 = vshrl.u32 %v178_v1, 7  ;;  %v1195_v43 = vmov 1326507024   ;;  %v1196_v49 = vmov 2102212464   ;;  %s1011_s5 = smul.u32 48, %s1321_s25 }
  0x3a   : > { %v1197_v52 = vmov 2475754826   ;;  %v1198_v61 = vmov 683565275   ;;  %s1024_s7 = smul.u32 768, %s1237_s13  ;;  %s893_s13 = scalar_lea.sflag [#allocation4], %s1321_s25 }
  0x3b   : > { %v188_v3 = vsub.s32 2, %v179_v2  ;;  %v180_v6 = vsub.s32 0, %v179_v2  ;;  %v184_v7 = vsub.s32 1, %v179_v2  ;;  %s1615_s6 = scalar_lea.vmem [#allocation5], %s1011_s5  ;;  %p1701_p11 = scmp.ne.s32.totalorder %s1692_s21, 0 }
  0x3c   : > { %164 = vrot.lane.b32.xlu0 %v1329_v0, %s1193_s3  ;;  %s907_s8 = sshll.u32 %s1615_s6, 4  ;;  %s1638_s17 = scalar_lea.hbm %s1688_s2, %s1024_s7  ;;  %s1640_s8 = int_to_ptr.vmem [resolvable:$true] %s907_s8 }
  0x3d   : > { %v189_v5 = vrot.slane %v176_v4, %v188_v3  ;;  %v181_v11 = vrot.slane %v176_v4, %v180_v6  ;;  %v185_v12 = vrot.slane %v176_v4, %v184_v7  ;;  %v1199_v7 = vmov 2131351028   ;;  %s1122_s19 = scalar_lea.vmem %s1640_s8, 768  ;;  %s1200_s23 = smov [#allocation5]  }
  0x3e   : > { %p1123_p6 = scmp.ne.s32.totalorder %s1640_s8, %s1122_s19  ;;  %s1126_s24 = sshll.u32 %s1200_s23, 4  ;;  %s1127_s24 = int_to_ptr.vmem [resolvable:$false] %s1126_s24 }
  0x3f   : > { %s1128_s26 = scalar_lea.vmem %s1127_s24, 1536  ;;  %p1129_p7 = scmp.lt.s32.totalorder %s1640_s8, %s1127_s24 }
  0x40   : > { %p1124_p12 = pnand %p1123_p6, %p1701_p11  ;;  %p1130_p10 = scmp.lt.s32.totalorder %s1128_s26, %s1122_s19 }
  0x42   : > { %p1125_p13 = pneg %p1124_p12  ;;  %p1131_p2 = por %p1130_p10, %p1129_p7 }
  0x44   : > { %p1132_p4 = pnand %p1131_p2, %p1125_p13 }
  0xaa   : > { %v162_v8 = vpop.permute.xlu0 %161  ;;  %v168_v13 = vpop.permute.xlu1 %167 }
  0xab   : > { %v171_v9 = vsel %vm170_vm0, %v1329_v0, %v162_v8 }
  0xac   : > { %v1342_v10 = vmul.f32 %v189_v5, %v171_v9 }
  0xae   : > { %v407_v14 = vand.u32 2139095040, %v1342_v10  ;;  %v165_v15 = vpop.permute.xlu0 %164  ;;  %v404_v21 = vand.u32 2147483647, %v1342_v10 }
  0xaf   : > { %v173_v16 = vsel %vm172_vm1, %v171_v9, %v165_v15 }
  0xb0   : > { %v408_v17 = vshrl.u32 %v407_v14, 23  ;;  %v175_v18 = vsel %vm174_vm2, %v173_v16, %v168_v13  ;;  %v411_v28 = vand.u32 8388607, %v404_v21 }
  0xb1   : > { %v1347_v19 = vmul.f32 %v181_v11, %v175_v18  ;;  %v1349_v20 = vmul.f32 %v185_v12, %v175_v18 }
  0xb2   : > { %v992_v22 = vadd.s32 4294967169, %v408_v17  ;;  %v412_v36 = vor.u32 8388608, %v411_v28 }
  0xb3   : > { %v199_v23 = vand.u32 2139095040, %v1347_v19  ;;  %v303_v24 = vand.u32 2139095040, %v1349_v20  ;;  %v196_v29 = vand.u32 2147483647, %v1347_v19  ;;  %v300_v40 = vand.u32 2147483647, %v1349_v20 }
  0xb4   : > { %v414_v25 = vadd.s32 1, %v992_v22  ;;  %v1368_v48 = vshll.u32 %v412_v36, 8 }
  0xb5   : > { %v200_v26 = vshrl.u32 %v199_v23, 23  ;;  %v304_v27 = vshrl.u32 %v303_v24, 23  ;;  %v1359_v38 = vand.u32 8388607, %v196_v29  ;;  %v1380_v57 = vand.u32 8388607, %v300_v40 }
  0xb6   : > { %vm415_vm3 = vcmp.gt.s32.totalorder %v414_v25, 0 }
  0xb7   : > { %v416_v30 = vsel %vm415_vm3, %v414_v25, 0  ;;  %v984_v31 = vadd.s32 4294967169, %v200_v26  ;;  %v988_v32 = vadd.s32 4294967169, %v304_v27  ;;  %v204_v54 = vor.u32 8388608, %v1359_v38 }
  0xb8   : > { %v418_v33 = vand.u32 31, %v416_v30  ;;  %v1361_v39 = vshrl.u32 %v416_v30, 5 }
  0xb9   : > { %v206_v34 = vadd.s32 1, %v984_v31  ;;  %v310_v35 = vadd.s32 1, %v988_v32 }
  0xba   : > { %v419_v37 = vsub.s32 32, %v418_v33  ;;  %v430_v50 = vshll.u32 %v1196_v49, %v418_v33  ;;  %v433_v51 = vshll.u32 %v1194_v41, %v418_v33  ;;  %vm439_vm6 = vcmp.lt.s32.totalorder %v1361_v39, 4 }
  0xbb   : > { %vm207_vm4 = vcmp.gt.s32.totalorder %v206_v34, 0  ;;  %vm311_vm5 = vcmp.gt.s32.totalorder %v310_v35, 0  ;;  %v421_v62 = vshll.u32 %v1198_v61, %v418_v33  ;;  %v424_v3 = vshll.u32 %v1197_v52, %v418_v33 }
  0xbc   : > { %v431_v42 = vshrl.u32 %v1194_v41, %v419_v37  ;;  %v434_v44 = vshrl.u32 %v1195_v43, %v419_v37  ;;  %v208_v45 = vsel %vm207_vm4, %v206_v34, 0  ;;  %v312_v47 = vsel %vm311_vm5, %v310_v35, 0 }
  0xbd   : > { %v1366_v46 = vand.u32 31, %v208_v45  ;;  %v422_v53 = vshrl.u32 %v1197_v52, %v419_v37  ;;  %v1375_v55 = vshrl.u32 %v208_v45, 5  ;;  %v1382_v60 = vand.u32 31, %v312_v47 }
  0xbe   : > { %v432_v58 = vor.u32 %v431_v42, %v430_v50  ;;  %v435_v59 = vor.u32 %v434_v44, %v433_v51  ;;  %v1386_v1 = vshrl.u32 %v312_v47, 5  ;;  %v420_v2 = vshrl.u32 %v1198_v61, %v419_v37 }
  0xbf   : > { %v211_v56 = vsub.s32 32, %v1366_v46  ;;  %v222_v4 = vshll.u32 %v1196_v49, %v1366_v46  ;;  %v423_v6 = vor.u32 %v422_v53, %v421_v62  ;;  %v425_v8 = vshrl.u32 %v1199_v7, %v419_v37 }
  0xc0   : > { %v225_v9 = vshll.u32 %v1194_v41, %v1366_v46  ;;  %vm231_vm7 = vcmp.lt.s32.totalorder %v1375_v55, 4  ;;  %v427_v11 = vshll.u32 %v1199_v7, %v418_v33  ;;  %v428_v12 = vshrl.u32 %v1196_v49, %v419_v37 }
  0xc1   : > { %v223_v63 = vshrl.u32 %v1194_v41, %v211_v56  ;;  %v226_v5 = vshrl.u32 %v1195_v43, %v211_v56  ;;  %v445_v13 = vsel %vm439_vm6, %v432_v58, 920167782  ;;  %v449_v14 = vsel %vm439_vm6, %v435_v59, 1326507024 }
  0xc2   : > { %v1404_v15 = vsub.s32 32, %v1382_v60  ;;  %v426_v16 = vor.u32 %v425_v8, %v424_v3  ;;  %v326_v18 = vshll.u32 %v1196_v49, %v1382_v60  ;;  %v429_v22 = vor.u32 %v428_v12, %v427_v11 }
  0xc3   : > { %v224_v17 = vor.u32 %v223_v63, %v222_v4  ;;  %vm436_vm8 = vcmp.lt.s32.totalorder %v1361_v39, 1  ;;  %v227_v23 = vor.u32 %v226_v5, %v225_v9  ;;  %vm437_vm9 = vcmp.lt.s32.totalorder %v1361_v39, 2 }
  0xc4   : > { %vm438_vm10 = vcmp.lt.s32.totalorder %v1361_v39, 3  ;;  %v440_v24 = vsel %vm436_vm8, %v420_v2, %v423_v6  ;;  %v441_v25 = vsel %vm439_vm6, %v429_v22, 2102212464  ;;  %v444_v26 = vsel %vm436_vm8, %v423_v6, %v426_v16 }
  0xc5   : > { %v446_v27 = vsel %vm438_vm10, %v429_v22, %v445_v13  ;;  %v448_v28 = vsel %vm436_vm8, %v426_v16, %v429_v22  ;;  %v327_v30 = vshrl.u32 %v1194_v41, %v1404_v15  ;;  %v442_v31 = vsel %vm438_vm10, %v426_v16, %v441_v25 }
  0xc6   : > { %v447_v32 = vsel %vm437_vm9, %v444_v26, %v446_v27  ;;  %v450_v33 = vsel %vm438_vm10, %v432_v58, %v449_v14  ;;  %v443_v34 = vsel %vm437_vm9, %v440_v24, %v442_v31  ;;  %v237_v39 = vsel %vm231_vm7, %v224_v17, 920167782 }
  0xc7   : > { %v451_v35 = vsel %vm437_vm9, %v448_v28, %v450_v33  ;;  %v1416_v36 = vmul.u32.u64.low %v1368_v48, %v447_v32  ;;  %v1417_v37 = vmul.u32.u64.high %v1368_v48, %v447_v32, %v1416_v36  ;;  %v241_v42 = vsel %vm231_vm7, %v227_v23, 1326507024 }
  0xc8   : > { %v1425_v44 = vmul.u32.u64.low %v1368_v48, %v451_v35  ;;  %v1426_v45 = vmul.u32.u64.high %v1368_v48, %v451_v35, %v1425_v44  ;;  %v213_v47 = vshll.u32 %v1198_v61, %v1366_v46  ;;  %v214_v50 = vshrl.u32 %v1197_v52, %v211_v56 }
  0xc9   : > { %v216_v51 = vshll.u32 %v1197_v52, %v1366_v46  ;;  %v217_v53 = vshrl.u32 %v1199_v7, %v211_v56  ;;  %v459_v58 = vmul.u32 %v1368_v48, %v443_v34  ;;  %v212_v59 = vshrl.u32 %v1198_v61, %v211_v56 }
  0xca   : > { %v219_v62 = vshll.u32 %v1199_v7, %v1366_v46  ;;  %v220_v63 = vshrl.u32 %v1196_v49, %v211_v56  ;;  %v462_v2 = vadd.s32 1, %v1417_v37  ;;  %v215_v3 = vor.u32 %v214_v50, %v213_v47 }
  0xcb   : > { %v218_v4 = vor.u32 %v217_v53, %v216_v51  ;;  %vm230_vm11 = vcmp.lt.s32.totalorder %v1375_v55, 3  ;;  %vm461_vm12 = vc.u32 %v1426_v45, %v1416_v36  ;;  %vm228_vm13 = vcmp.lt.s32.totalorder %v1375_v55, 1 }
  0xcc   : > { %v221_v5 = vor.u32 %v220_v63, %v219_v62  ;;  %v242_v48 = vsel %vm230_vm11, %v224_v17, %v241_v42  ;;  %v463_v6 = vsel %vm461_vm12, %v462_v2, %v1417_v37  ;;  %vm229_vm14 = vcmp.lt.s32.totalorder %v1375_v55, 2 }
  0xcd   : > { %v236_v46 = vsel %vm228_vm13, %v215_v3, %v218_v4  ;;  %v244_v56 = vshll.u32 %v204_v54, 8  ;;  %v464_v8 = vadd.s32 %v463_v6, %v459_v58  ;;  %v232_v13 = vsel %vm228_vm13, %v212_v59, %v215_v3 }
  0xce   : > { %v233_v9 = vsel %vm231_vm7, %v221_v5, 2102212464  ;;  %v238_v11 = vsel %vm230_vm11, %v221_v5, %v237_v39  ;;  %v240_v12 = vsel %vm228_vm13, %v218_v4, %v221_v5  ;;  %v330_v22 = vshrl.u32 %v1195_v43, %v1404_v15 }
  0xcf   : > { %v234_v14 = vsel %vm230_vm11, %v218_v4, %v233_v9  ;;  %v239_v16 = vsel %vm229_vm14, %v236_v46, %v238_v11  ;;  %v243_v17 = vsel %vm229_vm14, %v240_v12, %v242_v48  ;;  %v465_v23 = vadd.s32 536870912, %v464_v8 }
  0xd0   : > { %v1456_v38 = vmul.u32.u64.low %v244_v56, %v243_v17  ;;  %v1457_v54 = vmul.u32.u64.high %v244_v56, %v243_v17, %v1456_v38  ;;  %v328_v24 = vor.u32 %v327_v30, %v326_v18  ;;  %v329_v25 = vshll.u32 %v1194_v41, %v1382_v60 }
  0xd1   : > { %v1461_v26 = vmul.u32.u64.low %v244_v56, %v239_v16  ;;  %v1462_v27 = vmul.u32.u64.high %v244_v56, %v239_v16, %v1461_v26  ;;  %v1465_v28 = vshrl.u32 %v465_v23, 30  ;;  %v235_v31 = vsel %vm229_vm14, %v232_v13, %v234_v14 }
  0xd2   : > { %v318_v43 = vshrl.u32 %v1197_v52, %v1404_v15  ;;  %v321_v32 = vshrl.u32 %v1199_v7, %v1404_v15  ;;  %v317_v18 = vshll.u32 %v1198_v61, %v1382_v60  ;;  %v320_v41 = vshll.u32 %v1197_v52, %v1382_v60 }
  0xd3   : > { %v323_v30 = vshll.u32 %v1199_v7, %v1382_v60  ;;  %v324_v33 = vshrl.u32 %v1196_v49, %v1404_v15  ;;  %v331_v55 = vor.u32 %v330_v22, %v329_v25  ;;  %vm335_vm15 = vcmp.lt.s32.totalorder %v1386_v1, 4 }
  0xd4   : > { %v467_v34 = vshll.u32 %v1465_v28, 30  ;;  %vm253_vm3 = vc.u32 %v1457_v54, %v1461_v26  ;;  %v254_v35 = vadd.s32 1, %v1462_v27  ;;  %v319_v37 = vor.u32 %v318_v43, %v317_v18 }
  0xd5   : > { %v322_v39 = vor.u32 %v321_v32, %v320_v41  ;;  %v325_v42 = vor.u32 %v324_v33, %v323_v30  ;;  %v341_v52 = vsel %vm335_vm15, %v328_v24, 920167782  ;;  %v251_v7 = vmul.u32 %v244_v56, %v235_v31 }
  0xd6   : > { %v468_v60 = vsub.s32 %v464_v8, %v467_v34  ;;  %v308_v49 = vor.u32 8388608, %v1380_v57  ;;  %v255_v44 = vsel %vm253_vm3, %v254_v35, %v1462_v27  ;;  %vm332_vm4 = vcmp.lt.s32.totalorder %v1386_v1, 1 }
  0xd7   : > { %v256_v50 = vadd.s32 %v255_v44, %v251_v7  ;;  %vm334_vm5 = vcmp.lt.s32.totalorder %v1386_v1, 3  ;;  %v345_v51 = vsel %vm335_vm15, %v331_v55, 1326507024  ;;  %v340_v53 = vsel %vm332_vm4, %v319_v37, %v322_v39 }
  0xd8   : > { %v470_v47 = vsub.s32 0, %v468_v60  ;;  %v342_v58 = vsel %vm334_vm5, %v325_v42, %v341_v52  ;;  %v316_v57 = vshrl.u32 %v1198_v61, %v1404_v15  ;;  %vm333_vm6 = vcmp.lt.s32.totalorder %v1386_v1, 2 }
  0xd9   : > { %v348_v62 = vshll.u32 %v308_v49, 8  ;;  %v257_v63 = vadd.s32 536870912, %v256_v50  ;;  %v337_v2 = vsel %vm335_vm15, %v325_v42, 2102212464  ;;  %v343_v3 = vsel %vm333_vm6, %v340_v53, %v342_v58 }
  0xda   : > { %v993_v59 = vmin.u32 %v470_v47, %v468_v60  ;;  %v344_v4 = vsel %vm332_vm4, %v322_v39, %v325_v42  ;;  %v346_v48 = vsel %vm334_vm5, %v328_v24, %v345_v51  ;;  %v336_v56 = vsel %vm332_vm4, %v316_v57, %v319_v37 }
  0xdb   : > { %v1509_v6 = vmul.u32.u64.low %v348_v62, %v343_v3  ;;  %v1510_v46 = vmul.u32.u64.high %v348_v62, %v343_v3, %v1509_v6  ;;  %v1513_v61 = vshrl.u32 %v257_v63, 30  ;;  %v347_v8 = vsel %vm333_vm6, %v344_v4, %v346_v48 }
  0xdc   : > { %v472_v5 = vclz %v993_v59  ;;  %v338_v11 = vsel %vm334_vm5, %v322_v39, %v337_v2  ;;  %v1522_v12 = vmul.u32.u64.low %v348_v62, %v347_v8  ;;  %v1523_v13 = vmul.u32.u64.high %v348_v62, %v347_v8, %v1522_v12 }
  0xdd   : > { %v259_v9 = vshll.u32 %v1513_v61, 30  ;;  %v460_v14 = vadd.s32 %v1416_v36, %v1426_v45  ;;  %v339_v38 = vsel %vm333_vm6, %v336_v56, %v338_v11  ;;  %v358_v24 = vadd.s32 1, %v1510_v46 }
  0xde   : > { %v994_v15 = vadd.s32 4294967294, %v472_v5  ;;  %vm357_vm8 = vc.u32 %v1523_v13, %v1509_v6  ;;  %v355_v18 = vmul.u32 %v348_v62, %v339_v38  ;;  %v490_v1 = vsub.s32 4, %v1465_v28 }
  0xdf   : > { %v260_v17 = vsub.s32 %v256_v50, %v259_v9  ;;  %v359_v45 = vsel %vm357_vm8, %v358_v24, %v1510_v46  ;;  %vm406_vm10 = vcmp.lt.s32.totalorder %v1342_v10, 0  ;;  %vm405_vm11 = vcmp.le.f32.partialorder %v404_v21, 0.7853982 }
  0xe0   : > { %vm995_vm7 = vcmp.lt.s32.totalorder %v994_v15, 0  ;;  %v360_v33 = vadd.s32 %v359_v45, %v355_v18  ;;  %v491_v49 = vsel %vm406_vm10, %v490_v1, %v1465_v28  ;;  %v282_v56 = vsub.s32 4, %v1513_v61 }
  0xe1   : > { %v475_v16 = vsel %vm995_vm7, 0, %v994_v15  ;;  %v262_v25 = vsub.s32 0, %v260_v17  ;;  %v493_v63 = vsel %vm405_vm11, 0, %v491_v49  ;;  %vm198_vm12 = vcmp.lt.s32.totalorder %v1347_v19, 0 }
  0xe2   : > { %v476_v22 = vsub.s32 32, %v475_v16  ;;  %v480_v23 = vsub.s32 4294967266, %v475_v16  ;;  %v477_v27 = vshll.u32 %v468_v60, %v475_v16  ;;  %v361_v35 = vadd.s32 536870912, %v360_v33 }
  0xe3   : > { %v985_v32 = vmin.u32 %v262_v25, %v260_v17  ;;  %v252_v60 = vadd.s32 %v1461_v26, %v1457_v54  ;;  %v497_v5 = vadd.s32 3, %v493_v63  ;;  %v807_v15 = vand.u32 3, %v493_v63 }
  0xe4   : > { %v478_v31 = vshrl.u32 %v460_v14, %v476_v22  ;;  %v481_v43 = vadd.s32 127, %v480_v23  ;;  %v1534_v42 = vshrl.u32 %v361_v35, 30  ;;  %vm496_vm13 = vweird.f32 %v1342_v10 }
  0xe5   : > { %v264_v30 = vclz %v985_v32  ;;  %v498_v11 = vand.u32 3, %v497_v5  ;;  %vm809_vm15 = vcmp.eq.s32.totalorder %v807_v15, 0  ;;  %vm1549_vm3 = vcmp.le.f32.partialorder %v196_v29, 0.7853982 }
  0xe6   : > { %v479_v41 = vor.u32 %v478_v31, %v477_v27  ;;  %v482_v36 = vshll.u32 %v481_v43, 23  ;;  %v363_v50 = vshll.u32 %v1534_v42, 30  ;;  %v283_v16 = vsel %vm198_vm12, %v282_v56, %v1513_v61 }
  0xe7   : > { %v986_v34 = vadd.s32 4294967294, %v264_v30  ;;  %v356_v23 = vadd.s32 %v1509_v6, %v1523_v13  ;;  %vm812_vm4 = vcmp.eq.s32.totalorder %v807_v15, 2  ;;  %vm500_vm5 = vcmp.eq.s32.totalorder %v498_v11, 0 }
  0xe8   : > { %v483_v55 = vor.u32 4788187, %v482_v36  ;;  %v486_v39 = vcvt.s32.f32 %v479_v41  ;;  %v364_v57 = vsub.s32 %v360_v33, %v363_v50  ;;  %vm503_vm6 = vcmp.eq.s32.totalorder %v498_v11, 2 }
  0xe9   : > { %vm987_vm9 = vcmp.lt.s32.totalorder %v986_v34, 0  ;;  %v285_v6 = vsel %vm1549_vm3, 0, %v283_v16  ;;  %vm808_vm7 = vcmp.lt.s32.totalorder %v807_v15, 2  ;;  %vm499_vm8 = vcmp.lt.s32.totalorder %v498_v11, 2 }
  0xea   : > { %v484_v37 = vand.u32 2147483647, %v483_v55  ;;  %v267_v7 = vsel %vm987_vm9, 0, %v986_v34  ;;  %v366_v3 = vsub.s32 0, %v364_v57  ;;  %v289_v34 = vadd.s32 3, %v285_v6 }
  0xeb   : > { %v268_v44 = vsub.s32 32, %v267_v7  ;;  %v272_v47 = vsub.s32 4294967266, %v267_v7  ;;  %v269_v53 = vshll.u32 %v260_v17, %v267_v7  ;;  %v601_v7 = vand.u32 3, %v285_v6 }
  0xec   : > { %v487_v52 = vmul.f32 %v486_v39, %v484_v37  ;;  %v989_v4 = vmin.u32 %v366_v3, %v364_v57  ;;  %v290_v49 = vand.u32 3, %v289_v34  ;;  %vm302_vm9 = vcmp.lt.s32.totalorder %v1349_v20, 0 }
  0xed   : > { %v270_v58 = vshrl.u32 %v252_v60, %v268_v44  ;;  %v273_v59 = vadd.s32 127, %v272_v47  ;;  %v386_v47 = vsub.s32 4, %v1534_v42 }
  0xee   : > { %v488_v51 = vxor.u32 2147483648, %v487_v52  ;;  %v368_v21 = vclz %v989_v4 }
  0xef   : > { %v271_v54 = vor.u32 %v270_v58, %v269_v53  ;;  %v274_v26 = vshll.u32 %v273_v59, 23 }
  0xf0   : > { %v489_v62 = vsel %vm406_vm10, %v488_v51, %v487_v52  ;;  %v990_v9 = vadd.s32 4294967294, %v368_v21  ;;  %vm288_vm10 = vweird.f32 %v1347_v19 }
  0xf1   : > { %v492_v2 = vsel %vm405_vm11, %v1342_v10, %v489_v62  ;;  %v275_v28 = vor.u32 4788187, %v274_v26  ;;  %v278_v46 = vcvt.s32.f32 %v271_v54  ;;  %vm1580_vm11 = vcmp.le.f32.partialorder %v300_v40, 0.7853982 }
  0xf2   : > { %1080 = vcosq.f32 %v492_v2  ;;  %vm991_vm14 = vcmp.lt.s32.totalorder %v990_v9, 0  ;;  %v387_v62 = vsel %vm302_vm9, %v386_v47, %v1534_v42 }
  0xf3   : > { %1082 = vsinq.f32 %v492_v2  ;;  %v276_v48 = vand.u32 2147483647, %v275_v28  ;;  %v371_v17 = vsel %vm991_vm14, 0, %v990_v9  ;;  %vm606_vm14 = vcmp.eq.s32.totalorder %v601_v7, 2 }
  0xf4   : > { %v372_v38 = vsub.s32 32, %v371_v17  ;;  %v376_v24 = vsub.s32 4294967266, %v371_v17  ;;  %v373_v29 = vshll.u32 %v364_v57, %v371_v17  ;;  %v389_v4 = vsel %vm1580_vm11, 0, %v387_v62 }
  0xf5   : > { %v279_v8 = vmul.f32 %v278_v46, %v276_v48  ;;  %v393_v48 = vadd.s32 3, %v389_v4  ;;  %v704_v46 = vand.u32 3, %v389_v4 }
  0xf6   : > { %v374_v32 = vshrl.u32 %v356_v23, %v372_v38  ;;  %v377_v61 = vadd.s32 127, %v376_v24 }
  0xf7   : > { %v280_v12 = vxor.u32 2147483648, %v279_v8  ;;  %v394_v21 = vand.u32 3, %v393_v48 }
  0xf8   : > { %v375_v36 = vor.u32 %v374_v32, %v373_v29  ;;  %v378_v45 = vshll.u32 %v377_v61, 23 }
  0xf9   : > { %v281_v22 = vsel %vm198_vm12, %v280_v12, %v279_v8  ;;  %vm602_vm12 = vcmp.lt.s32.totalorder %v601_v7, 2 }
  0xfa   : > { %v284_v27 = vsel %vm1549_vm3, %v1347_v19, %v281_v22  ;;  %v379_v35 = vor.u32 4788187, %v378_v45  ;;  %v382_v60 = vcvt.s32.f32 %v375_v36  ;;  %vm292_vm3 = vcmp.eq.s32.totalorder %v290_v49, 0 }
  0xfb   : > { %1084 = vcosq.f32 %v284_v27 }
  0xfc   : > { %v1081_v25 = vpop.eup %1080  ;;  %1086 = vsinq.f32 %v284_v27  ;;  %v380_v52 = vand.u32 2147483647, %v379_v35 }
  0xfd   : > { %v1083_v31 = vpop.eup %1082  ;;  %v504_v43 = vxor.u32 2147483648, %v1081_v25 }
  0xfe   : > { %v501_v18 = vxor.u32 2147483648, %v1083_v31  ;;  %v383_v44 = vmul.f32 %v382_v60, %v380_v52 }
  0xff   : > { %v814_v13 = vsel %vm812_vm4, %v504_v43, %v1083_v31  ;;  %v505_v41 = vsel %vm503_vm6, %v504_v43, %v1083_v31  ;;  %vm291_vm4 = vcmp.lt.s32.totalorder %v290_v49, 2  ;;  %vm399_vm6 = vcmp.eq.s32.totalorder %v394_v21, 2 }
 0x100   : > { %v811_v30 = vsel %vm809_vm15, %v1081_v25, %v501_v18  ;;  %v502_v33 = vsel %vm500_vm5, %v1081_v25, %v501_v18  ;;  %v384_v51 = vxor.u32 2147483648, %v383_v44  ;;  %vm295_vm15 = vcmp.eq.s32.totalorder %v290_v49, 2 }
 0x101   : > { %v815_v55 = vsel %vm808_vm7, %v811_v30, %v814_v13  ;;  %v506_v1 = vsel %vm499_vm8, %v502_v33, %v505_v41  ;;  %vm709_vm5 = vcmp.eq.s32.totalorder %v704_v46, 2  ;;  %vm706_vm7 = vcmp.eq.s32.totalorder %v704_v46, 0 }
 0x102   : > { %v1565_v37 = vsel %vm496_vm13, nan, %v815_v55  ;;  %v1569_v39 = vsel %vm496_vm13, nan, %v506_v1  ;;  %vm603_vm13 = vcmp.eq.s32.totalorder %v601_v7, 0  ;;  %v385_v57 = vsel %vm302_vm9, %v384_v51, %v383_v44 }
 0x103   : > { %874 = vrot.lane.b32.xlu0 %v1565_v37, %s1193_s3  ;;  %870 = vrot.lane.b32.xlu1 %v1569_v39, %s1191_s28  ;;  %v388_v40 = vsel %vm1580_vm11, %v1349_v20, %v385_v57  ;;  %vm396_vm8 = vcmp.eq.s32.totalorder %v394_v21, 0  ;;  %vm705_vm9 = vcmp.lt.s32.totalorder %v704_v46, 2  ;;  %vm392_vm11 = vweird.f32 %v1349_v20 }
 0x104   : > { %1088 = vcosq.f32 %v388_v40 }
 0x105   : > { %v1085_v50 = vpop.eup %1084  ;;  %1090 = vsinq.f32 %v388_v40 }
 0x106   : > { %v1087_v53 = vpop.eup %1086  ;;  %v296_v58 = vxor.u32 2147483648, %v1085_v50 }
 0x107   : > { %v293_v59 = vxor.u32 2147483648, %v1087_v53 }
 0x108   : > { %v608_v63 = vsel %vm606_vm14, %v296_v58, %v1087_v53  ;;  %v297_v2 = vsel %vm295_vm15, %v296_v58, %v1087_v53 }
 0x109   : > { %v605_v54 = vsel %vm603_vm13, %v1085_v50, %v293_v59  ;;  %v294_v26 = vsel %vm292_vm3, %v1085_v50, %v293_v59 }
 0x10a   : > { %v609_v3 = vsel %vm602_vm12, %v605_v54, %v608_v63  ;;  %v298_v28 = vsel %vm291_vm4, %v294_v26, %v297_v2 }
 0x10b   : > { %v610_v42 = vsel %vm288_vm10, nan, %v609_v3  ;;  %v299_v5 = vsel %vm288_vm10, nan, %v298_v28  ;;  %vm395_vm10 = vcmp.lt.s32.totalorder %v394_v21, 2 }
 0x10c   : > { %828 = vrot.lane.b32.xlu0 %v610_v42, %s1192_s30  ;;  %818 = vrot.lane.b32.xlu1 %v299_v5, %s1191_s28 }
 0x10e   : > { %v1089_v15 = vpop.eup %1088 }
 0x10f   : > { %v1091_v56 = vpop.eup %1090  ;;  %v400_v8 = vxor.u32 2147483648, %v1089_v15 }
 0x110   : > { %834 = vrot.lane.b32.xlu0 %v610_v42, %s1191_s28  ;;  %831 = vrot.lane.b32.xlu1 %v299_v5, %s1192_s30  ;;  %v397_v9 = vxor.u32 2147483648, %v1091_v56 }
 0x111   : > { %v711_v19 = vsel %vm709_vm5, %v400_v8, %v1091_v56  ;;  %v401_v11 = vsel %vm399_vm6, %v400_v8, %v1091_v56 }
 0x112   : > { %v708_v12 = vsel %vm706_vm7, %v1089_v15, %v397_v9  ;;  %v398_v14 = vsel %vm396_vm8, %v1089_v15, %v397_v9 }
 0x113   : > { %v712_v16 = vsel %vm705_vm9, %v708_v12, %v711_v19  ;;  %v402_v17 = vsel %vm395_vm10, %v398_v14, %v401_v11 }
 0x114   : > { %v713_v22 = vsel %vm392_vm11, nan, %v712_v16  ;;  %v403_v23 = vsel %vm392_vm11, nan, %v402_v17 }
 0x115   : > { %848 = vrot.lane.b32.xlu0 %v713_v22, %s1192_s30  ;;  %838 = vrot.lane.b32.xlu1 %v403_v23, %s1191_s28 }
 0x119   : > { %866 = vrot.lane.b32.xlu0 %v713_v22, %s1191_s28  ;;  %851 = vrot.lane.b32.xlu1 %v403_v23, %s1192_s30 }
 0x11d   : > { %822 = vrot.lane.b32.xlu0 %v610_v42, %s1193_s3  ;;  %842 = vrot.lane.b32.xlu1 %v713_v22, %s1193_s3 }
 0x121   : > { %845 = vrot.lane.b32.xlu0 %v403_v23, %s1193_s3  ;;  %825 = vrot.lane.b32.xlu1 %v299_v5, %s1193_s3 }
 0x125   : > { %880 = vrot.lane.b32.xlu0 %v1565_v37, %s1192_s30  ;;  %877 = vrot.lane.b32.xlu1 %v1569_v39, %s1193_s3 }
 0x175   : > { %v871_v20 = vpop.permute.xlu1 %870  ;;  %v875_v38 = vpop.permute.xlu0 %874 }
 0x17e   : > { %v819_v24 = vpop.permute.xlu1 %818  ;;  %v829_v25 = vpop.permute.xlu0 %828 }
 0x17f   : > { %v854_v55 = vsel %vm170_vm0, %v1329_v0, %v819_v24 }
 0x182   : > { %v832_v27 = vpop.permute.xlu1 %831  ;;  %v835_v32 = vpop.permute.xlu0 %834 }
 0x183   : > { %v857_v29 = vsel %vm170_vm0, %v829_v25, %v832_v27 }
 0x184   : > { %v858_v31 = vsel %vm172_vm1, %v857_v29, %v610_v42 }
 0x185   : > { %v859_v43 = vsel %vm174_vm2, %v858_v31, %v299_v5 }
 0x186   : > { %887 = vst [vmem:[%s1615_s6 + $0x8] sm:$0xff] %v859_v43 }
 0x187   : > { %v839_v61 = vpop.permute.xlu1 %838  ;;  %v849_v18 = vpop.permute.xlu0 %848 }
 0x188   : > { %v860_v1 = vsel %vm170_vm0, %v835_v32, %v839_v61 }
 0x18b   : > { %v852_v6 = vpop.permute.xlu1 %851  ;;  %v867_v13 = vpop.permute.xlu0 %866 }
 0x18c   : > { %v863_v41 = vsel %vm170_vm0, %v849_v18, %v852_v6  ;;  %v883_v52 = vsel %vm170_vm0, %v867_v13, %v871_v20 }
 0x18d   : > { %v864_v36 = vsel %vm172_vm1, %v863_v41, %v713_v22  ;;  %v884_v49 = vsel %vm172_vm1, %v883_v52, %v875_v38 }
 0x18e   : > { %v865_v45 = vsel %vm174_vm2, %v864_v36, %v403_v23 }
 0x18f   : > { %889 = vst [vmem:[%s1615_s6 + $0x18] sm:$0xff] %v865_v45  ;;  %v843_v30 = vpop.permute.xlu1 %842  ;;  %v823_v33 = vpop.permute.xlu0 %822 }
 0x190   : > { %v861_v34 = vsel %vm172_vm1, %v860_v1, %v843_v30  ;;  %v855_v35 = vsel %vm172_vm1, %v854_v55, %v823_v33 }
 0x193   : > { %v826_v37 = vpop.permute.xlu1 %825  ;;  %v846_v39 = vpop.permute.xlu0 %845 }
 0x194   : > { %v856_v60 = vsel %vm174_vm2, %v855_v35, %v826_v37  ;;  %v862_v7 = vsel %vm174_vm2, %v861_v34, %v846_v39 }
 0x195   : > { %886 = vst [vmem:[%s1615_s6] sm:$0xff] %v856_v60  ;;  %888 = vst [vmem:[%s1615_s6 + $0x10] sm:$0xff] %v862_v7 }
 0x197   : > { %v878_v0 = vpop.permute.xlu1 %877  ;;  %v881_v44 = vpop.permute.xlu0 %880 }
 0x198   : > { %v885_v47 = vsel %vm174_vm2, %v884_v49, %v878_v0  ;;  %891 = vst.msk [vmem:[%s1615_s6 + $0x28] sm:$0xff] %vm170_vm0, %v881_v44 }
 0x199   : > { %890 = vst [vmem:[%s1615_s6 + $0x20] sm:$0xff] %v885_v47 }
 0x19a   : > { %1135 = shalt.err (!%p1132_p4)
}
 0x19b   : > { %s1136_s25 = scalar_lea.hbm %s1638_s17, 768  ;;  %s1140_s28 = scalar_lea.hbm %s1688_s2, 1536 }
 0x19c   : > { %p1137_p5 = scmp.ne.s32.totalorder %s1638_s17, %s1136_s25  ;;  %p1141_p0 = scmp.lt.u32.totalorder %s1638_s17, %s1688_s2 }
 0x19d   : > { %p1142_p1 = scmp.lt.u32.totalorder %s1140_s28, %s1136_s25  ;;  %p1144_p6 = scmp.lt.u32.totalorder %s1136_s25, %s1638_s17 }
 0x19e   : > { %p1138_p8 = pnand %p1137_p5, %p1701_p11 }
 0x19f   : > { %p1143_p3 = por %p1142_p1, %p1141_p0 }
 0x1a0   : > { %p1139_p9 = pneg %p1138_p8 }
 0x1a1   : > { %p1145_p12 = por %p1144_p6, %p1143_p3 }
 0x1a3   : > { %p1146_p13 = pnand %p1145_p12, %p1139_p9 }
 0x1a5   : > { %1149 = shalt.err (!%p1146_p13)
}
 0x1a6   : > { %1027 = dma.vmem_to_hbm [thread:$0]  (%p1701_p11), %s1640_s8, 768, %s1638_s17, %s893_s13  }
 0x1a7 PF: > { %s919_s4 = sand.u32 1, %s1176_s9   ;;  %p1702_p7 = scmp.ne.s32.totalorder %s1693_s22, 0 }
 0x1a8   : > { %p1703_p10 = scmp.ge.s32.totalorder %s1188_s12, 2  ;;  %s920_s20 = scalar_lea.sflag [#allocation4], %s919_s4 }
 0x1aa   : > { %p1034_p2 = pnand %p1703_p10, %p1702_p7 }
 0x1ac   : > { %1171 = dma.done.wait (!%p1034_p2), %s920_s20, 768  }
 0x1ad   : > { %1173 = vsyncadd (!%p1034_p2), %s920_s20, 4294966528  ;;  %p15_p4 = scmp.ge.s32.totalorder %s1241_s15, 4   ;;  %s1704_s9 = smov %s1180_s10 }
 0x1ae   : > { %s1705_s10 = smov %s1184_s11  ;;  %s1706_s11 = smov %s1253_s18 }
 0x1af   : > { %s1707_s12 = smov %s1241_s15  ;;  %17 = sbr.rel (!%p15_p4) target bundleno = 5 (0x5), region = 73 }
 0x1b6   :  { %925 = vsyncpa [#allocation3], 1 }
 0x1b7   :  { %927 = vsyncpa [#allocation3 + $0x1], 1 }
 0x1b8   :  { %928 = vsyncpa [#allocation4], 1 }
 0x1b9   :  { %930 = vsyncpa [#allocation4 + $0x1], 1 }

</bundles_post_ra>
